<compile_context>
chip_gen: v5e
topology: v5e:2x2
jax: 0.10.0
libtpu: 0.0.40
codegen_flags: <defaults>
</compile_context>

<pallas_src>
import functools

import numpy as np
import jax
import jax.numpy as jnp
from jax.experimental import pallas as pl
from jax.experimental.pallas import tpu as pltpu


# ----------------------------------------------------------------------------
# Host-side (compile-time) B-spline -> piecewise-polynomial conversion.
# ----------------------------------------------------------------------------

def _poly_mul_linear(P, a, b):
    """(a + b*x) * P with P: (n_seg, npow) ascending-power coeffs (truncated)."""
    out = a * P
    out[:, 1:] = out[:, 1:] + b * P[:, :-1]
    return out


def _basis_segment_polys(grid_size, degree, lo=-5.0, hi=5.0):
    """Per-basis, per-segment power-basis polynomial coefficients.

    Runs the same half-open Cox-de Boor recursion as the reference, but on
    polynomial restrictions to each non-degenerate knot segment, in float64.
    Returns (num_basis, n_seg, degree+1), ascending powers of x.
    """
    knots = np.linspace(lo, hi, grid_size)
    full = np.concatenate([np.repeat(lo, degree), knots, np.repeat(hi, degree)])
    nk = len(full)
    n_seg = grid_size - 1
    npow = degree + 1

    # degree-0: B_j == 1 on segment s iff interval j is [knots[s], knots[s+1]).
    B = []
    for j in range(nk - 1):
        arr = np.zeros((n_seg, npow))
        s = j - degree
        if 0 <= s < n_seg and full[j + 1] > full[j]:
            arr[s, 0] = 1.0
        B.append(arr)

    for d in range(1, degree + 1):
        new_b = []
        for j in range(nk - 1 - d):
            arr = np.zeros((n_seg, npow))
            den1 = full[j + d] - full[j]
            if den1 > 0.0:
                arr = arr + _poly_mul_linear(B[j], -full[j] / den1, 1.0 / den1)
            den2 = full[j + d + 1] - full[j + 1]
            if den2 > 0.0:
                arr = arr + _poly_mul_linear(B[j + 1], full[j + d + 1] / den2,
                                             -1.0 / den2)
            new_b.append(arr)
        B = new_b
    # len(B) == grid_size + degree - 1 == num_basis
    return np.stack(B, axis=0)


def _round_up(a, b):
    return (a + b - 1) // b * b


# ----------------------------------------------------------------------------
# Pallas kernel.
# ----------------------------------------------------------------------------

def _kan_edge_kernel(breaks, degree, params_ref, x_ref, o_ref):
    """params_ref: SMEM f32[(n_seg*(degree+1)) + 1]; first n_seg*npow entries
    are the w_spline-folded piecewise-polynomial coefficients, the last entry
    is 0.5*w_base.  x_ref / o_ref: (TM, C) VMEM tiles."""
    xf = x_ref[...].astype(jnp.float32)

    n_seg = len(breaks) - 1
    npow = degree + 1

    # SiLU with w_base folded:  w_base*silu(x) = h*tanh(x/2) + h,  h = 0.5*w_base*x.
    # The transcendental rides the otherwise-idle EUP.
    t = jnp.tanh(0.5 * xf)
    h = params_ref[n_seg * npow] * xf
    base_term = h * t + h

    # Shared segment-boundary compares (interior knots only).
    # TODO(synk): for grid_size >~ 16 this unrolled select chain would spill
    # vregs; switch to an arithmetic segment index over the uniform knots.
    lt = [xf < breaks[k] for k in range(1, n_seg)]

    # Per-power coefficient selection:
    #   if x < breaks[1]: P[0] elif x < breaks[2]: P[1] ... else P[n_seg-1]
    cs = []
    for p in range(npow):
        c = params_ref[(n_seg - 1) * npow + p]
        for s in range(n_seg - 2, -1, -1):
            c = jnp.where(lt[s], params_ref[s * npow + p], c)
        cs.append(c)

    # Horner evaluation of the coeff-folded piecewise polynomial (w_spline
    # already folded in host-side).
    spline = cs[npow - 1]
    for p in range(npow - 2, -1, -1):
        spline = spline * xf + cs[p]

    # Zero outside the clamped support [-5, 5): half-open convention, matching
    # the degree-0 indicators / nan_to_num(..., 0.0) of the reference.
    in_range = (xf >= breaks[0]) & (xf < breaks[-1])
    spline = jnp.where(in_range, spline, 0.0)

    o_ref[...] = (base_term + spline).astype(o_ref.dtype)


# ----------------------------------------------------------------------------
# Wrapper.
# ----------------------------------------------------------------------------

_TILE_BYTES_CAP = 4 << 20      # per-tile (single-buffer) VMEM budget
_VMEM_LIMIT = 32 << 20         # requested scoped VMEM (fits v5e/v6e/v7x)


def kan_edge_forward(x, spline_coeffs, w_base, w_spline, *, grid_size,
                     spline_degree, relation_property=None, tile_rows=None):
    assert x.ndim == 2
    N, D = x.shape
    num_basis = grid_size + spline_degree - 1
    assert spline_coeffs.shape == (num_basis,)

    n_seg = grid_size - 1
    npow = spline_degree + 1
    breaks = [float(t) for t in np.linspace(-5.0, 5.0, grid_size)]

    # --- compile-time piecewise polynomials; fold coeffs and w_spline (f32) ---
    A = jnp.asarray(_basis_segment_polys(grid_size, spline_degree), jnp.float32)
    poly = jnp.einsum("i,isp->sp", spline_coeffs.astype(jnp.float32), A)
    poly = (jnp.asarray(w_spline, jnp.float32).reshape(()) * poly).reshape(-1)
    half_wb = (0.5 * jnp.asarray(w_base, jnp.float32)).reshape((1,))
    params = jnp.concatenate([poly, half_wb])          # (n_seg*npow + 1,)

    # --- lane-dense 2D slab (purely elementwise op => reshape is layout-only) ---
    itemsize = jnp.dtype(x.dtype).itemsize
    sub = max(8, 8 * (4 // max(1, itemsize)))          # 8 f32 / 16 bf16 / 32 int8
    T = N * D
    if D % 128 == 0:
        slab, R, C = x, N, D
    elif T % 128 == 0:
        C = 128
        for k in range(min(T // 128, 4096 // 128), 0, -1):
            if T % (128 * k) == 0:
                C = 128 * k
                break
        R = T // C
        slab = x.reshape(R, C)
    else:
        slab, R, C = x, N, D                           # masked stores; rare

    # --- row tiling: large (<=4 MiB) tiles, no host-side pad/slice for ragged
    #     R (Pallas masks the partial last block), >=2 tiles for v7x megacore.
    bytes_per_row = itemsize * max(1, C)
    cap_rows = max(sub, ((_TILE_BYTES_CAP // bytes_per_row) // sub) * sub)
    if tile_rows is None:
        eff_tile = cap_rows
    else:
        eff_tile = max(sub, min(_round_up(tile_rows, sub), cap_rows))
    n_tiles = max(1, pl.cdiv(R, eff_tile))
    if n_tiles < 2 and R >= 2 * sub:
        n_tiles = 2
    tm = _round_up(max(1, pl.cdiv(R, n_tiles)), sub)
    n_tiles = max(1, pl.cdiv(R, tm))

    kernel = functools.partial(_kan_edge_kernel, breaks, spline_degree)

    flops_per_elem = 2 * npow + (n_seg - 1) * (npow + 1) + 8
    out = pl.pallas_call(
        kernel,
        out_shape=jax.ShapeDtypeStruct((R, C), x.dtype),
        grid=(n_tiles,),
        in_specs=[
            pl.BlockSpec(memory_space=pltpu.MemorySpace.SMEM),   # folded params
            pl.BlockSpec((tm, C), lambda i: (i, 0)),             # x tile
        ],
        out_specs=pl.BlockSpec((tm, C), lambda i: (i, 0)),
        compiler_params=pltpu.CompilerParams(
            dimension_semantics=("parallel",),
            vmem_limit_bytes=_VMEM_LIMIT),
        cost_estimate=pl.CostEstimate(
            flops=int(flops_per_elem) * R * C,
            transcendentals=R * C,
            bytes_accessed=2 * itemsize * R * C),
    )(params, slab)

    if (R, C) != (N, D):
        out = out.reshape(N, D)
    if relation_property == "symmetric":
        # TODO(synk): a fused paired-tile variant would save the extra HBM read
        # of `out`, but needs an in-kernel sublane reversal (lax.rev) that
        # Mosaic does not reliably lower; kept as XLA glue (fuses to one pass).
        out = 0.5 * (out + jnp.flip(out, axis=0))
    return out


# ----------------------------------------------------------------------------
# Pure-JAX reference (full Cox-de Boor, half-open intervals) for validation.
# ----------------------------------------------------------------------------

def _reference(x, spline_coeffs, w_base, w_spline, grid_size, spline_degree,
               relation_property=None):
    knots = np.linspace(-5.0, 5.0, grid_size)
    full = [float(t) for t in np.concatenate(
        [np.repeat(-5.0, spline_degree), knots, np.repeat(5.0, spline_degree)])]
    nk = len(full)
    B = []
    for i in range(nk - 1):
        t0, t1 = full[i], full[i + 1]
        B.append(jnp.where((x >= t0) & (x < t1), 1.0, 0.0) if t1 > t0
                 else jnp.zeros_like(x))
    for d in range(1, spline_degree + 1):
        new_b = []
        for i in range(nk - 1 - d):
            term = jnp.zeros_like(x)
            den1 = full[i + d] - full[i]
            if den1 > 0.0:
                term = term + (x - full[i]) / den1 * B[i]
            den2 = full[i + d + 1] - full[i + 1]
            if den2 > 0.0:
                term = term + (full[i + d + 1] - x) / den2 * B[i + 1]
            new_b.append(term)
        B = new_b
    basis_vals = jnp.stack(B, axis=-1)
    spline = jnp.matmul(basis_vals, spline_coeffs)
    base = x * jax.nn.sigmoid(x)
    out = w_base * base + w_spline * spline
    if relation_property == "symmetric":
        out = 0.5 * (out + jnp.flip(out, axis=0))
    return out


if __name__ == "__main__":
    grid_size = 5          # num_knots
    spline_degree = 3
    num_basis = grid_size + spline_degree - 1   # 7

    key = jax.random.PRNGKey(0)
    kx, kc, kx2, kx3 = jax.random.split(key, 4)

    # Parameters mirroring __init__: w_base = w_spline = 1, coeffs = randn*0.1.
    spline_coeffs = jax.random.normal(kc, (num_basis,), dtype=jnp.float32) * 0.1
    w_base = jnp.float32(1.0)
    w_spline = jnp.float32(1.0)

    # --- test 1: small (N, D), values well inside (-5, 5), 2-tile grid ---
    x1 = jax.random.normal(kx, (16, 128), dtype=jnp.float32)
    out1 = jax.block_until_ready(
        kan_edge_forward(x1, spline_coeffs, w_base, w_spline,
                         grid_size=grid_size, spline_degree=spline_degree))
    ref1 = _reference(x1, spline_coeffs, w_base, w_spline,
                      grid_size, spline_degree)
    np.testing.assert_allclose(np.asarray(out1), np.asarray(ref1),
                               rtol=2e-5, atol=2e-5)

    # --- test 2: ragged N (partial last block, no host pad), values crossing
    #             +/-5, plus the 'symmetric' glue path ---
    x2 = 3.0 * jax.random.normal(kx2, (520, 256), dtype=jnp.float32)
    out2 = jax.block_until_ready(
        kan_edge_forward(x2, spline_coeffs, w_base, w_spline,
                         grid_size=grid_size, spline_degree=spline_degree,
                         relation_property="symmetric"))
    ref2 = _reference(x2, spline_coeffs, w_base, w_spline,
                      grid_size, spline_degree, relation_property="symmetric")
    np.testing.assert_allclose(np.asarray(out2), np.asarray(ref2),
                               rtol=2e-5, atol=2e-5)

    # --- test 3: D not a multiple of 128 -> lane-dense slab reshape path ---
    x3 = 2.0 * jax.random.normal(kx3, (64, 96), dtype=jnp.float32)
    out3 = jax.block_until_ready(
        kan_edge_forward(x3, spline_coeffs, w_base, w_spline,
                         grid_size=grid_size, spline_degree=spline_degree))
    ref3 = _reference(x3, spline_coeffs, w_base, w_spline,
                      grid_size, spline_degree)
    np.testing.assert_allclose(np.asarray(out3), np.asarray(ref3),
                               rtol=2e-5, atol=2e-5)

    # TODO(synk): scipy's basis_element with extrapolate=False includes the
    # exact right endpoint x == +5.0 in the last basis support; the half-open
    # convention used here differs only at that single point.
    print("KERNEL_OK")
</pallas_src>

<mosaic_0001>
module attributes {stable_mosaic.version = 11 : i64} {
  func.func @_kan_edge_kernel(%arg0: i32, %arg1: memref<17xf32, #tpu.memory_space<smem>>, %arg2: memref<8x128xf32, #tpu.memory_space<vmem>>, %arg3: memref<8x128xf32, #tpu.memory_space<vmem>>) attributes {dimension_semantics = [#tpu.dimension_semantics<parallel>], iteration_bounds = array<i64: 2>, scalar_prefetch = 0 : i64, scratch_operands = 0 : i64, tpu.core_type = #tpu.core_type<tc>, window_params = [{transform_indices = @transform_0, window_bounds = array<i64: 17>}, {transform_indices = @transform_1, window_bounds = array<i64: 8, 128>}, {transform_indices = @transform_2, window_bounds = array<i64: 8, 128>}]} {
    %c0 = arith.constant 0 : index
    %c0_0 = arith.constant 0 : index
    %0 = vector.load %arg2[%c0, %c0_0] : memref<8x128xf32, #tpu.memory_space<vmem>>, vector<8x128xf32>
    %cst = arith.constant 5.000000e-01 : f32
    %1 = vector.broadcast %cst : f32 to vector<8x128xf32>
    %2 = arith.mulf %1, %0 : vector<8x128xf32>
    %3 = math.tanh %2 : vector<8x128xf32>
    %c16 = arith.constant 16 : index
    %4 = memref.load %arg1[%c16] : memref<17xf32, #tpu.memory_space<smem>>
    %5 = vector.broadcast %4 : f32 to vector<8x128xf32>
    %6 = arith.mulf %5, %0 : vector<8x128xf32>
    %7 = arith.mulf %6, %3 : vector<8x128xf32>
    %8 = arith.addf %7, %6 : vector<8x128xf32>
    %cst_1 = arith.constant -2.500000e+00 : f32
    %9 = vector.broadcast %cst_1 : f32 to vector<8x128xf32>
    %10 = arith.cmpf olt, %0, %9 : vector<8x128xf32>
    %cst_2 = arith.constant 0.000000e+00 : f32
    %11 = vector.broadcast %cst_2 : f32 to vector<8x128xf32>
    %12 = arith.cmpf olt, %0, %11 : vector<8x128xf32>
    %cst_3 = arith.constant 2.500000e+00 : f32
    %13 = vector.broadcast %cst_3 : f32 to vector<8x128xf32>
    %14 = arith.cmpf olt, %0, %13 : vector<8x128xf32>
    %c12 = arith.constant 12 : index
    %15 = memref.load %arg1[%c12] : memref<17xf32, #tpu.memory_space<smem>>
    %c8 = arith.constant 8 : index
    %16 = memref.load %arg1[%c8] : memref<17xf32, #tpu.memory_space<smem>>
    %17 = vector.broadcast %16 : f32 to vector<8x128xf32>
    %18 = vector.broadcast %15 : f32 to vector<8x128xf32>
    %19 = arith.select %14, %17, %18 : vector<8x128xi1>, vector<8x128xf32>
    %c4 = arith.constant 4 : index
    %20 = memref.load %arg1[%c4] : memref<17xf32, #tpu.memory_space<smem>>
    %21 = vector.broadcast %20 : f32 to vector<8x128xf32>
    %22 = arith.select %12, %21, %19 : vector<8x128xi1>, vector<8x128xf32>
    %c0_4 = arith.constant 0 : index
    %23 = memref.load %arg1[%c0_4] : memref<17xf32, #tpu.memory_space<smem>>
    %24 = vector.broadcast %23 : f32 to vector<8x128xf32>
    %25 = arith.select %10, %24, %22 : vector<8x128xi1>, vector<8x128xf32>
    %c13 = arith.constant 13 : index
    %26 = memref.load %arg1[%c13] : memref<17xf32, #tpu.memory_space<smem>>
    %c9 = arith.constant 9 : index
    %27 = memref.load %arg1[%c9] : memref<17xf32, #tpu.memory_space<smem>>
    %28 = vector.broadcast %27 : f32 to vector<8x128xf32>
    %29 = vector.broadcast %26 : f32 to vector<8x128xf32>
    %30 = arith.select %14, %28, %29 : vector<8x128xi1>, vector<8x128xf32>
    %c5 = arith.constant 5 : index
    %31 = memref.load %arg1[%c5] : memref<17xf32, #tpu.memory_space<smem>>
    %32 = vector.broadcast %31 : f32 to vector<8x128xf32>
    %33 = arith.select %12, %32, %30 : vector<8x128xi1>, vector<8x128xf32>
    %c1 = arith.constant 1 : index
    %34 = memref.load %arg1[%c1] : memref<17xf32, #tpu.memory_space<smem>>
    %35 = vector.broadcast %34 : f32 to vector<8x128xf32>
    %36 = arith.select %10, %35, %33 : vector<8x128xi1>, vector<8x128xf32>
    %c14 = arith.constant 14 : index
    %37 = memref.load %arg1[%c14] : memref<17xf32, #tpu.memory_space<smem>>
    %c10 = arith.constant 10 : index
    %38 = memref.load %arg1[%c10] : memref<17xf32, #tpu.memory_space<smem>>
    %39 = vector.broadcast %38 : f32 to vector<8x128xf32>
    %40 = vector.broadcast %37 : f32 to vector<8x128xf32>
    %41 = arith.select %14, %39, %40 : vector<8x128xi1>, vector<8x128xf32>
    %c6 = arith.constant 6 : index
    %42 = memref.load %arg1[%c6] : memref<17xf32, #tpu.memory_space<smem>>
    %43 = vector.broadcast %42 : f32 to vector<8x128xf32>
    %44 = arith.select %12, %43, %41 : vector<8x128xi1>, vector<8x128xf32>
    %c2 = arith.constant 2 : index
    %45 = memref.load %arg1[%c2] : memref<17xf32, #tpu.memory_space<smem>>
    %46 = vector.broadcast %45 : f32 to vector<8x128xf32>
    %47 = arith.select %10, %46, %44 : vector<8x128xi1>, vector<8x128xf32>
    %c15 = arith.constant 15 : index
    %48 = memref.load %arg1[%c15] : memref<17xf32, #tpu.memory_space<smem>>
    %c11 = arith.constant 11 : index
    %49 = memref.load %arg1[%c11] : memref<17xf32, #tpu.memory_space<smem>>
    %50 = vector.broadcast %49 : f32 to vector<8x128xf32>
    %51 = vector.broadcast %48 : f32 to vector<8x128xf32>
    %52 = arith.select %14, %50, %51 : vector<8x128xi1>, vector<8x128xf32>
    %c7 = arith.constant 7 : index
    %53 = memref.load %arg1[%c7] : memref<17xf32, #tpu.memory_space<smem>>
    %54 = vector.broadcast %53 : f32 to vector<8x128xf32>
    %55 = arith.select %12, %54, %52 : vector<8x128xi1>, vector<8x128xf32>
    %c3 = arith.constant 3 : index
    %56 = memref.load %arg1[%c3] : memref<17xf32, #tpu.memory_space<smem>>
    %57 = vector.broadcast %56 : f32 to vector<8x128xf32>
    %58 = arith.select %10, %57, %55 : vector<8x128xi1>, vector<8x128xf32>
    %59 = arith.mulf %58, %0 : vector<8x128xf32>
    %60 = arith.addf %59, %47 : vector<8x128xf32>
    %61 = arith.mulf %60, %0 : vector<8x128xf32>
    %62 = arith.addf %61, %36 : vector<8x128xf32>
    %63 = arith.mulf %62, %0 : vector<8x128xf32>
    %64 = arith.addf %63, %25 : vector<8x128xf32>
    %cst_5 = arith.constant -5.000000e+00 : f32
    %65 = vector.broadcast %cst_5 : f32 to vector<8x128xf32>
    %66 = arith.cmpf oge, %0, %65 : vector<8x128xf32>
    %cst_6 = arith.constant 5.000000e+00 : f32
    %67 = vector.broadcast %cst_6 : f32 to vector<8x128xf32>
    %68 = arith.cmpf olt, %0, %67 : vector<8x128xf32>
    %69 = arith.andi %66, %68 : vector<8x128xi1>
    %cst_7 = arith.constant 0.000000e+00 : f32
    %70 = vector.broadcast %cst_7 : f32 to vector<8x128xf32>
    %71 = arith.select %69, %64, %70 : vector<8x128xi1>, vector<8x128xf32>
    %72 = arith.addf %8, %71 : vector<8x128xf32>
    %c0_8 = arith.constant 0 : index
    %c0_9 = arith.constant 0 : index
    %73 = vector.load %arg3[%c0_8, %c0_9] : memref<8x128xf32, #tpu.memory_space<vmem>>, vector<8x128xf32>
    tpu.vector_store %arg3[%c0_8, %c0_9], %72 {strides = array<i32>} : memref<8x128xf32, #tpu.memory_space<vmem>>, vector<8x128xf32>,
    return
  }
  func.func @transform_0(%arg0: i32) -> i32 {
    %c0_i32 = arith.constant 0 : i32
    %c0_i32_0 = arith.constant 0 : i32
    return %c0_i32 : i32
  }
  func.func @transform_1(%arg0: i32) -> (i32, i32) {
    %c0_i32 = arith.constant 0 : i32
    %c0_i32_0 = arith.constant 0 : i32
    return %arg0, %c0_i32 : i32, i32
  }
  func.func @transform_2(%arg0: i32) -> (i32, i32) {
    %c0_i32 = arith.constant 0 : i32
    %c0_i32_0 = arith.constant 0 : i32
    return %arg0, %c0_i32 : i32, i32
  }
}

</mosaic_0001>

<bundles_post_ra>
// kernel: tpu_custom_call.1
= control target key start
LH: loop header
LB: loop body
LE: loop exit
PB: predicated region body
PF: predicated region fallthrough
CT: control target
= control target key end

     0   :  { %7 = vsyncpa [#allocation5], 0  ;;  %s746_s0 = inlined_call_operand.hbm [shape: f32[17], index: 0, kind: input, shape index: {}]   ;;  %s747_s1 = inlined_call_operand.hbm [shape: f32[16,128], index: 1, kind: input, shape index: {}]   ;;  %s748_s2 = inlined_call_operand.hbm [shape: f32[16,128], index: 2, kind: output, shape index: {}]  }
   0x1   :  { %8 = vsyncpa [#allocation3], 0 }
   0x2   :  { %10 = vsyncpa [#allocation3 + $0x1], 0 }
   0x3   :  { %11 = vsyncpa [#allocation4], 0 }
   0x4   :  { %13 = vsyncpa [#allocation4 + $0x1], 0  ;;  %s562_s9 = smov 0   ;;  %s564_s10 = smov 0  }
   0x5   :  { %s566_s11 = smov 0   ;;  %s568_s12 = smov 0  }
   0x6 LB: > { %s583_s13 = sadd.s32 4294967295, %s544_s12   ;;  %s340_s14 = sadd.s32 4294967294, %s544_s12   ;;  %s544_s12 = sphi %s568_s12, %s758_s12   ;;  %s540_s11 = sphi %s566_s11, %s757_s11   ;;  %s536_s10 = sphi %s564_s10, %s756_s10   ;;  %s532_s9 = sphi %s562_s9, %s755_s9  }
   0x7   : > { %p60_p0 = scmp.ne.s32.totalorder %s536_s10, %s532_s9  ;;  %p61_p1 = scmp.eq.s32.totalorder %s583_s13, 0 }
   0x8   : > { %p84_p2 = scmp.eq.s32.totalorder %s583_s13, 1  ;;  %p90_p3 = scmp.eq.s32.totalorder %s340_s14, 1 }
   0x9   : > { %p592_p4 = por %p61_p1, %p60_p0  ;;  %p341_p5 = scmp.ge.s32.totalorder %s544_s12, 1 }
   0xa   : > { %p597_p6 = por %p90_p3, %p60_p0  ;;  %p97_p7 = scmp.lt.s32.totalorder %s544_s12, 3 }
   0xb   : > { %s109_s19 = sshll.u32 %s746_s0, 4  ;;  %s613_s21 = sadd.s32 1, %s544_s12   ;;  %s110_s19 = int_to_ptr.hbm [resolvable:$true] %s109_s19 }
   0xc   : > { %p605_p8 = pnand %p341_p5, %p97_p7  ;;  %s44_s22 = ssub.s32 %s544_s12, %s613_s21 }
   0xd   : > { %p45_p12 = scmp.eq.s32.totalorder %s44_s22, 0  ;;  %s47_s23 = sadd.s32 1, %s540_s11 }
   0xe   : > { %p378_p10 = pneg %p605_p8  ;;  %p54_p13 = scmp.ne.s32.totalorder %s540_s11, %s536_s10 }
   0xf   : > { %s546_s24 = smov [#allocation2]   ;;  %p55_p0 = scmp.eq.s32.totalorder %s544_s12, 0 }
  0x10   : > { %p379_p11 = pnand %p378_p10, %p61_p1  ;;  %p628_p3 = por %p84_p2, %p54_p13 }
  0x11   : > { %s623_s25 = scalar_select %p45_p12, %s540_s11, %s47_s23  }
  0x12   : > { %381 = dma.hbm_to_smem (!%p379_p11), %s110_s19, 16, %s546_s24, [#allocation5]  }
  0x13   : > { %s120_s27 = sand.u32 1, %s540_s11   ;;  %p56_p5 = por %p55_p0, %p54_p13 }
  0x14   : > { %p391_p7 = scmp.lt.s32.totalorder %s544_s12, 2  ;;  %s344_s28 = sshll.u32 %s120_s27, 3 }
  0x15   : > { %s345_s29 = sshll.u32 %s544_s12, 3  ;;  %s124_s6 = scalar_lea.vmem [#allocation6], %s344_s28 }
  0x16   : > { %s128_s4 = scalar_lea.hbm %s747_s1, %s345_s29  ;;  %s132_s7 = sshll.u32 %s124_s6, 4  ;;  %s133_s7 = int_to_ptr.vmem [resolvable:$true] %s132_s7 }
  0x17   : > { %s130_s5 = sshll.u32 %s128_s4, 4  ;;  %p638_p10 = pnand %p391_p7, %p56_p5  ;;  %s131_s5 = int_to_ptr.hbm [resolvable:$true] %s130_s5 }
  0x18   : > { %s121_s14 = scalar_lea.sflag [#allocation3], %s120_s27  ;;  %s444_s17 = sshra.s32 %s131_s5, 4  ;;  %s445_s17 = int_to_ptr.hbm [resolvable:$true] %s444_s17 }
  0x19   : > { %s446_s18 = scalar_lea.hbm %s445_s17, 8  ;;  %p448_p11 = pneg %p638_p10 }
  0x1a   : > { %p447_p2 = scmp.ne.s32.totalorder %s445_s17, %s446_s18  ;;  %s451_s23 = scalar_lea.hbm %s747_s1, 16 }
  0x1b   : > { %p452_p0 = scmp.lt.s32.totalorder %s445_s17, %s747_s1  ;;  %p453_p5 = scmp.lt.s32.totalorder %s451_s23, %s446_s18 }
  0x1c   : > { %p449_p12 = pnand %p448_p11, %p447_p2 }
  0x1d   : > { %p454_p7 = por %p453_p5, %p452_p0 }
  0x1e   : > { %p450_p13 = pneg %p449_p12 }
  0x20   : > { %p455_p9 = pnand %p454_p7, %p450_p13 }
  0x22   : > { %458 = shalt.err (!%p455_p9)
}
  0x23   : > { %385 = dma.hbm_to_vmem [thread:$0]  (!%p638_p10), %s131_s5, 128, %s133_s7, %s121_s14  }
  0x24   : > { %141 = sbr.rel (%p605_p8) target bundleno = 88 (0x58), region = 28 }
  0x29   : > { %519 = dma.done.wait (%p61_p1), [#allocation5], 16  }
  0x2a   : > { %521 = vsyncadd (%p61_p1), [#allocation5], 4294967280  ;;  %s659_s27 = sand.u32 1, %s536_s10  }
  0x2b   : > { %s348_s29 = sshll.u32 %s659_s27, 3  ;;  %s149_s30 = scalar_lea.sflag [#allocation3], %s659_s27 }
  0x2c   : > { %s152_s3 = scalar_lea.vmem [#allocation6], %s348_s29 }
  0x2d   : > { %523 = dma.done.wait (%p592_p4), %s149_s30, 128  }
  0x2e   : > { %525 = vsyncadd (%p592_p4), %s149_s30, 4294967168 }
  0x2f   : > { %158 = sfence }
  0x30   : > { %s669_s20 = sld [smem:[#allocation2 + $0x10]]  ;;  %v175_v0 = vld [vmem:[%s152_s3] sm:$0xff] }
  0x31   : > { %s671_s4 = sld [smem:[#allocation2 + $0xc]]  ;;  %v176_v1 = vmul.f32 0.5, %v175_v0  ;;  %vm185_vm0 = vcmp.lt.f32.partialorder %v175_v0, 2.5  ;;  %vm183_vm1 = vcmp.lt.f32.partialorder %v175_v0, -2.5  ;;  %vm184_vm2 = vcmp.lt.f32.partialorder %v175_v0, 0.0 }
  0x32   : > { %s673_s5 = sld [smem:[#allocation2 + $0x8]]  ;;  %vm236_vm3 = vcmp.ge.f32.partialorder %v175_v0, -5.0  ;;  %vm237_vm4 = vcmp.lt.f32.partialorder %v175_v0, 5.0 }
  0x33   : > { %s675_s6 = sld [smem:[#allocation2 + $0xd]]  ;;  %427 = vtanh.f32 %v176_v1  ;;  %vm238_vm5 = vmand %vm236_vm3, %vm237_vm4 }
  0x34   : > { %s677_s7 = sld [smem:[#allocation2 + $0x9]] }
  0x35   : > { %s679_s8 = sld [smem:[#allocation2 + $0x5]] }
  0x36   : > { %s681_s14 = sld [smem:[#allocation2 + $0x1]]  ;;  %v179_v9 = vstv %s669_s20  ;;  %s367_s20 = sshll.u32 %s583_s13, 3 }
  0x37   : > { %s358_s17 = sld [smem:[#allocation2 + $0xe]]  ;;  %v189_v18 = vstv %s671_s4  ;;  %v180_v27 = vmul.f32 %v179_v9, %v175_v0 }
  0x38   : > { %s359_s18 = sld [smem:[#allocation2 + $0xa]]  ;;  %v188_v17 = vstv %s673_s5 }
  0x39   : > { %s360_s15 = sld [smem:[#allocation2 + $0x6]]  ;;  %v200_v7 = vstv %s675_s6  ;;  %v428_v26 = vpop.eup %427  ;;  %v190_v28 = vsel %vm185_vm0, %v188_v17, %v189_v18  ;;  %s253_s6 = scalar_lea.hbm %s748_s2, %s367_s20 }
  0x3a   : > { %s683_s19 = sld [smem:[#allocation2 + $0x2]]  ;;  %v199_v6 = vstv %s677_s7  ;;  %v181_v35 = vmul.f32 %v428_v26, %v180_v27  ;;  %s174_s7 = scalar_lea.vmem [#allocation7], %s348_s29 }
  0x3b   : > { %s362_s22 = sld [smem:[#allocation2 + $0xf]]  ;;  %v201_v13 = vsel %vm185_vm0, %v199_v6, %v200_v7  ;;  %v203_v14 = vstv %s679_s8  ;;  %s255_s8 = sshll.u32 %s174_s7, 4  ;;  %s256_s8 = int_to_ptr.vmem [resolvable:$true] %s255_s8 }
  0x3c   : > { %s363_s23 = sld [smem:[#allocation2 + $0xb]]  ;;  %v204_v23 = vsel %vm184_vm2, %v203_v14, %v201_v13  ;;  %v206_v24 = vstv %s681_s14  ;;  %v182_v39 = vadd.f32 %v181_v35, %v180_v27  ;;  %s257_s13 = sshll.u32 %s253_s6, 4  ;;  %s258_s13 = int_to_ptr.hbm [resolvable:$true] %s257_s13 }
  0x3d   : > { %v211_v2 = vstv %s358_s17  ;;  %s364_s24 = sld [smem:[#allocation2 + $0x7]]  ;;  %v207_v31 = vsel %vm183_vm1, %v206_v24, %v204_v23  ;;  %s243_s14 = scalar_lea.sflag [#allocation4], %s659_s27 }
  0x3e   : > { %v210_v3 = vstv %s359_s18  ;;  %s365_s28 = sld [smem:[#allocation2 + $0x3]]  ;;  %s488_s17 = sshra.s32 %s258_s13, 4  ;;  %s489_s17 = int_to_ptr.hbm [resolvable:$true] %s488_s17 }
  0x3f   : > { %s685_s30 = sld [smem:[#allocation2 + $0x4]]  ;;  %v212_v4 = vsel %vm185_vm0, %v210_v3, %v211_v2  ;;  %v214_v5 = vstv %s360_s15  ;;  %s490_s18 = scalar_lea.hbm %s489_s17, 8 }
  0x40   : > { %s691_s3 = sld [smem:[#allocation2]]  ;;  %v215_v10 = vsel %vm184_vm2, %v214_v5, %v212_v4  ;;  %v217_v11 = vstv %s683_s19  ;;  %p491_p1 = scmp.ne.s32.totalorder %s489_s17, %s490_s18 }
  0x41   : > { %v222_v8 = vstv %s362_s22  ;;  %v218_v21 = vsel %vm183_vm1, %v217_v11, %v215_v10  ;;  %s494_s29 = scalar_lea.hbm %s748_s2, 16  ;;  %p495_p9 = scmp.lt.s32.totalorder %s489_s17, %s748_s2 }
  0x42   : > { %v221_v12 = vstv %s363_s23  ;;  %p492_p4 = pnand %p491_p1, %p628_p3  ;;  %p496_p10 = scmp.lt.s32.totalorder %s494_s29, %s490_s18 }
  0x43   : > { %v223_v15 = vsel %vm185_vm0, %v221_v12, %v222_v8  ;;  %v225_v16 = vstv %s364_s24 }
  0x44   : > { %v226_v19 = vsel %vm184_vm2, %v225_v16, %v223_v15  ;;  %v228_v20 = vstv %s365_s28  ;;  %p493_p8 = pneg %p492_p4  ;;  %p497_p2 = por %p496_p10, %p495_p9 }
  0x45   : > { %v229_v22 = vsel %vm183_vm1, %v228_v20, %v226_v19  ;;  %v192_v29 = vstv %s685_s30 }
  0x46   : > { %v230_v25 = vmul.f32 %v229_v22, %v175_v0  ;;  %v193_v32 = vsel %vm184_vm2, %v192_v29, %v190_v28  ;;  %v195_v33 = vstv %s691_s3  ;;  %p498_p11 = pnand %p497_p2, %p493_p8 }
  0x47   : > { %v196_v37 = vsel %vm183_vm1, %v195_v33, %v193_v32 }
  0x48   : > { %v231_v30 = vadd.f32 %v230_v25, %v218_v21 }
  0x4a   : > { %v232_v34 = vmul.f32 %v231_v30, %v175_v0 }
  0x4c   : > { %v233_v36 = vadd.f32 %v232_v34, %v207_v31 }
  0x4e   : > { %v234_v38 = vmul.f32 %v233_v36, %v175_v0 }
  0x50   : > { %v235_v40 = vadd.f32 %v234_v38, %v196_v37 }
  0x52   : > { %v239_v41 = vsel %vm238_vm5, %v235_v40, 0.0 }
  0x53   : > { %v240_v42 = vadd.f32 %v239_v41, %v182_v39 }
  0x55   : > { %241 = vst [vmem:[%s174_s7] sm:$0xff] %v240_v42 }
  0x56   : > { %501 = shalt.err (!%p498_p11)
}
  0x57   : > { %376 = dma.vmem_to_hbm [thread:$0]  (%p628_p3), %s256_s8, 128, %s258_s13, %s243_s14  }
  0x58 PF: > { %s269_s27 = sand.u32 1, %s532_s9   ;;  %p754_p12 = scmp.ge.s32.totalorder %s544_s12, 2 }
  0x59   : > { %s270_s24 = scalar_lea.sflag [#allocation4], %s269_s27 }
  0x5a   : > { %p387_p13 = pnand %p754_p12, %p597_p6 }
  0x5c   : > { %p388_p0 = pneg %p387_p13 }
  0x5e   : > { %527 = dma.done.wait (%p388_p0), %s270_s24, 128  }
  0x5f   : > { %529 = vsyncadd (%p388_p0), %s270_s24, 4294967168  ;;  %p16_p5 = scmp.ge.s32.totalorder %s613_s21, 4   ;;  %s755_s9 = smov %s536_s10 }
  0x60   : > { %s756_s10 = smov %s540_s11  ;;  %s757_s11 = smov %s623_s25 }
  0x61   : > { %s758_s12 = smov %s613_s21  ;;  %18 = sbr.rel (!%p16_p5) target bundleno = 6 (0x6), region = 78 }
  0x66   :  { %276 = vsyncpa [#allocation3], 1 }
  0x67   :  { %278 = vsyncpa [#allocation3 + $0x1], 1 }
  0x68   :  { %279 = vsyncpa [#allocation4], 1 }
  0x69   :  { %281 = vsyncpa [#allocation4 + $0x1], 1 }
  0x6a   :  { %282 = vsyncpa [#allocation5], 1 }
  0x6b   :  { %284 = vsyncpa [#allocation5 + $0x1], 1 }

</bundles_post_ra>
